<compile_context>
chip_gen: v6e
topology: v6e:2x2x1
jax: 0.10.0
libtpu: 0.0.40
codegen_flags: <defaults>
</compile_context>

<pallas_src>
import jax
import jax.numpy as jnp
from jax.experimental import pallas as pl
from jax.experimental.pallas import tpu as pltpu

MAX_LENGTH = 77
PACKED_W = MAX_LENGTH + 1     # [length, tok_0, ..., tok_76]
CLS_ID = 101
SEP_ID = 102
PAD_ID = 0

_SUBLANES = 8
_SINGLE_TILE_MAX = 1024       # below this: one full-array block (no pad, no slice)
_MAX_TILE_B = 4096            # ~5 MiB double-buffered VMEM at 4096 rows (v7x-safe)


def _round_up(x: int, m: int) -> int:
    return ((x + m - 1) // m) * m


def _choose_batch_tiling(B: int) -> tuple[int, int]:
    """Returns (padded_batch, batch_tile) with batch_tile dividing padded_batch."""
    if B <= _SINGLE_TILE_MAX:
        # One full-array block is legal for any B (block == full dims): no batch
        # padding, no trailing row slice, minimal launch overhead.  Covers the
        # typical SD conditioning case (B <= 8) where wall time is pure overhead.
        return B, B
    b_pad = _round_up(B, _SUBLANES)
    # Large tiles amortize per-grid-step overhead, but keep >= 2 grid steps so
    # both v7x TensorCores are fed, and cap the tile well under scoped VMEM.
    max_tile = min(_MAX_TILE_B, _round_up(pl.cdiv(b_pad, 2), _SUBLANES))
    # Prefer a multiple-of-8 tile that exactly divides b_pad: avoids padding the
    # batch up to a tile multiple (dead DMA rows + an output row-slice copy).
    tile_b = _SUBLANES
    t = _SUBLANES
    while t <= max_tile:
        if b_pad % t == 0:
            tile_b = t
        t += _SUBLANES
    # Degenerate divisor structure (e.g. 8 * prime): accept a little batch
    # padding instead of thousands of tiny grid steps.
    if b_pad // tile_b > 4 * pl.cdiv(b_pad, max_tile):
        tile_b = max_tile
        b_pad = _round_up(B, tile_b)
    return b_pad, tile_b


def _pack_tokens_kernel(packed_ref, out_ref):
    """Builds BERT-style padded token ids for one batch tile.

    packed_ref: (TILE_B, 78) int32 -- column 0 = content length, column j (j>=1)
                = raw content token j-1, i.e. already the token that belongs at
                output position j (no cross-lane shift needed in-kernel).
    out_ref:    (TILE_B, 77) int32 -- [CLS] content[:n] [SEP] PAD...
    """
    packed = packed_ref[...]                                  # (tb, 78)
    tb = packed.shape[0]
    # truncation=True, max_length=77 => at most 75 content tokens.
    n = jnp.clip(packed[:, :1], 0, MAX_LENGTH - 2)            # (tb, 1)
    pos = jax.lax.broadcasted_iota(jnp.int32, (tb, MAX_LENGTH), 1)
    body = packed[:, :MAX_LENGTH]                             # offset-0 slice: no lane move;
                                                              # col 0 (length) shadowed by CLS.
    out_ref[...] = jnp.where(
        pos == 0,
        jnp.int32(CLS_ID),
        jnp.where(
            pos <= n,
            body,
            jnp.where(pos == n + 1, jnp.int32(SEP_ID), jnp.int32(PAD_ID)),
        ),
    )


def bert_tokenizer_forward(raw_ids: jax.Array, lengths: jax.Array) -> jax.Array:
    """Pallas-backed equivalent of BERTTokenizer.forward's tensor output.

    raw_ids: (B, MAX_LENGTH) int content token ids (already WordPiece ids)
    lengths: (B,) int number of valid content tokens per sequence
    returns: (B, MAX_LENGTH) int32 input_ids
    """
    B, L = raw_ids.shape
    assert L == MAX_LENGTH
    b_pad, tile_b = _choose_batch_tiling(B)

    # Single small wrapper op: prepend the length column.  This folds the
    # second input stream into the ids slab *and* pre-aligns the content so the
    # kernel needs no roll.  int32 cast is free here (new buffer is written
    # anyway); callers holding int16 ids may pass them directly too.
    packed = jnp.concatenate(
        [lengths.reshape(B, 1).astype(jnp.int32), raw_ids.astype(jnp.int32)],
        axis=1,
    )
    if b_pad != B:
        packed = jnp.pad(packed, ((0, b_pad - B), (0, 0)))

    out = pl.pallas_call(
        _pack_tokens_kernel,
        out_shape=jax.ShapeDtypeStruct((b_pad, MAX_LENGTH), jnp.int32),
        grid=(b_pad // tile_b,),
        in_specs=[pl.BlockSpec((tile_b, PACKED_W), lambda i: (i, 0))],
        out_specs=pl.BlockSpec((tile_b, MAX_LENGTH), lambda i: (i, 0)),
        compiler_params=pltpu.CompilerParams(dimension_semantics=("parallel",)),
        cost_estimate=pl.CostEstimate(
            flops=8 * b_pad * MAX_LENGTH,
            transcendentals=0,
            bytes_accessed=b_pad * (PACKED_W + MAX_LENGTH) * 4,
        ),
    )(packed)

    return out if b_pad == B else out[:B]


def _reference(raw_ids, lengths):
    """Plain-numpy reference of the HF padding/truncation semantics."""
    import numpy as np

    raw_ids = np.asarray(raw_ids)
    lengths = np.asarray(lengths)
    B = raw_ids.shape[0]
    out = np.full((B, MAX_LENGTH), PAD_ID, dtype=np.int32)
    for b in range(B):
        n = int(min(max(int(lengths[b]), 0), MAX_LENGTH - 2))
        out[b, 0] = CLS_ID
        out[b, 1:1 + n] = raw_ids[b, :n]
        out[b, 1 + n] = SEP_ID
    return out


if __name__ == "__main__":
    import numpy as np

    key = jax.random.PRNGKey(0)
    k_ids, k_len = jax.random.split(key)

    # Small, typical SD-conditioning batch.
    B = 4
    raw_ids = jax.random.randint(
        k_ids, (B, MAX_LENGTH), minval=1000, maxval=30000, dtype=jnp.int32
    )
    # Lengths span short sequences and values long enough to trigger truncation.
    lengths = jax.random.randint(k_len, (B,), minval=3, maxval=90, dtype=jnp.int32)

    tokens = jax.block_until_ready(bert_tokenizer_forward(raw_ids, lengths))
    np.testing.assert_array_equal(np.asarray(tokens), _reference(raw_ids, lengths))

    # Also exercise the tiled large-batch path (batch not a multiple of 8).
    k_ids2, k_len2 = jax.random.split(jax.random.PRNGKey(1))
    B2 = 1157
    raw_ids2 = jax.random.randint(
        k_ids2, (B2, MAX_LENGTH), minval=1000, maxval=30000, dtype=jnp.int32
    )
    lengths2 = jax.random.randint(k_len2, (B2,), minval=0, maxval=90, dtype=jnp.int32)
    tokens2 = jax.block_until_ready(bert_tokenizer_forward(raw_ids2, lengths2))
    np.testing.assert_array_equal(np.asarray(tokens2), _reference(raw_ids2, lengths2))

    print("KERNEL_OK")
</pallas_src>

<mosaic_0001>
module attributes {stable_mosaic.version = 11 : i64} {
  func.func @_pack_tokens_kernel(%arg0: i32, %arg1: memref<4x78xi32, #tpu.memory_space<vmem>>, %arg2: memref<4x77xi32, #tpu.memory_space<vmem>>) attributes {dimension_semantics = [#tpu.dimension_semantics<parallel>], iteration_bounds = array<i64: 1>, scalar_prefetch = 0 : i64, scratch_operands = 0 : i64, tpu.core_type = #tpu.core_type<tc>, window_params = [{transform_indices = @transform_0, window_bounds = array<i64: 4, 78>}, {transform_indices = @transform_1, window_bounds = array<i64: 4, 77>}]} {
    %c0 = arith.constant 0 : index
    %c0_0 = arith.constant 0 : index
    %0 = vector.load %arg1[%c0, %c0_0] : memref<4x78xi32, #tpu.memory_space<vmem>>, vector<4x78xi32>
    %1 = vector.extract_strided_slice %0 {offsets = [0, 0], sizes = [4, 1], strides = [1, 1]} : vector<4x78xi32> to vector<4x1xi32>
    %c0_i32 = arith.constant 0 : i32
    %c75_i32 = arith.constant 75 : i32
    %2 = vector.broadcast %c0_i32 : i32 to vector<4x1xi32>
    %3 = arith.maxsi %2, %1 : vector<4x1xi32>
    %4 = vector.broadcast %c75_i32 : i32 to vector<4x1xi32>
    %5 = arith.minsi %4, %3 : vector<4x1xi32>
    %6 = tpu.iota {dimensions = array<i32: 1>} : vector<4x77xi32>
    %7 = vector.extract_strided_slice %0 {offsets = [0, 0], sizes = [4, 77], strides = [1, 1]} : vector<4x78xi32> to vector<4x77xi32>
    %c0_i32_1 = arith.constant 0 : i32
    %8 = vector.broadcast %c0_i32_1 : i32 to vector<4x77xi32>
    %9 = arith.cmpi eq, %6, %8 : vector<4x77xi32>
    %10 = vector.broadcast %5 : vector<4x1xi32> to vector<4x77xi32>
    %11 = arith.cmpi sle, %6, %10 : vector<4x77xi32>
    %c1_i32 = arith.constant 1 : i32
    %12 = vector.broadcast %c1_i32 : i32 to vector<4x1xi32>
    %13 = arith.addi %5, %12 : vector<4x1xi32>
    %14 = vector.broadcast %13 : vector<4x1xi32> to vector<4x77xi32>
    %15 = arith.cmpi eq, %6, %14 : vector<4x77xi32>
    %c102_i32 = arith.constant 102 : i32
    %c0_i32_2 = arith.constant 0 : i32
    %16 = vector.broadcast %c102_i32 : i32 to vector<4x77xi32>
    %17 = vector.broadcast %c0_i32_2 : i32 to vector<4x77xi32>
    %18 = arith.select %15, %16, %17 : vector<4x77xi1>, vector<4x77xi32>
    %19 = arith.select %11, %7, %18 : vector<4x77xi1>, vector<4x77xi32>
    %c101_i32 = arith.constant 101 : i32
    %20 = vector.broadcast %c101_i32 : i32 to vector<4x77xi32>
    %21 = arith.select %9, %20, %19 : vector<4x77xi1>, vector<4x77xi32>
    %c0_3 = arith.constant 0 : index
    %c0_4 = arith.constant 0 : index
    %22 = vector.load %arg2[%c0_3, %c0_4] : memref<4x77xi32, #tpu.memory_space<vmem>>, vector<4x77xi32>
    tpu.vector_store %arg2[%c0_3, %c0_4], %21 {strides = array<i32>} : memref<4x77xi32, #tpu.memory_space<vmem>>, vector<4x77xi32>,
    return
  }
  func.func @transform_0(%arg0: i32) -> (i32, i32) {
    %c0_i32 = arith.constant 0 : i32
    %c0_i32_0 = arith.constant 0 : i32
    return %arg0, %c0_i32 : i32, i32
  }
  func.func @transform_1(%arg0: i32) -> (i32, i32) {
    %c0_i32 = arith.constant 0 : i32
    %c0_i32_0 = arith.constant 0 : i32
    return %arg0, %c0_i32 : i32, i32
  }
}

</mosaic_0001>

<bundles_post_ra>
// kernel: tpu_custom_call.1
= control target key start
LH: loop header
LB: loop body
LE: loop exit
PB: predicated region body
PF: predicated region fallthrough
CT: control target
= control target key end

     0   :  { %6 = vsyncpa [#allocation3], 0  ;;  %s125_s0 = inlined_call_operand.hbm [shape: s32[4,78], index: 0, kind: input, shape index: {}]   ;;  %s126_s1 = inlined_call_operand.hbm [shape: s32[4,77], index: 1, kind: output, shape index: {}]  }
   0x1   :  { %7 = vsyncpa [#allocation4], 0  ;;  %s106_s6 = smov [#allocation2]  }
   0x2   :  { %s14_s7 = sshll.u32 %s106_s6, 4  ;;  %s15_s7 = int_to_ptr.vmem [resolvable:$true] %s14_s7 }
   0x3   :  { %s70_s8 = scalar_lea.vmem %s15_s7, 64  ;;  %p75_p1 = scmp.lt.s32.totalorder %s15_s7, %s15_s7 }
   0x4   :  { %p71_p0 = scmp.ne.s32.totalorder %s15_s7, %s70_s8  ;;  %p76_p2 = scmp.lt.s32.totalorder %s70_s8, %s70_s8 }
   0x6   :  { %p77_p3 = por %p76_p2, %p75_p1 }
   0x8   :  { %p78_p4 = pnand %p77_p3, %p71_p0 }
   0xa   :  { %81 = shalt.err (!%p78_p4)
}
   0xb   :  { %17 = dma.hbm_to_vmem [thread:$0]  %s125_s0, 64, %s15_s7, [#allocation3]  }
   0xc   :  { %102 = dma.done.wait [#allocation3], 64  }
   0xd   :  { %103 = vsyncadd [#allocation3], 4294967232  ;;  %v107_v0 = vmov 0   ;;  %v21_v1 = vld [vmem:[#allocation2] sm:$0xf]  ;;  %v26_v5 = vlaneseq  ;;  %s108_s11 = smov [#allocation5]  }
   0xe   :  { %61 = vset.pattern.permute.xlu0 %v107_v0  ;;  %vm22_vm0 = vcmp.gt.s32.totalorder %v21_v1, 0  ;;  %s49_s12 = sshll.u32 %s108_s11, 4  ;;  %vm41_vm5 = vcmask 625664   ;;  %s50_s12 = int_to_ptr.vmem [resolvable:$true] %s49_s12 }
   0xf   :  { %v23_v2 = vsel %vm22_vm0, %v21_v1, 0  ;;  %v27_v6 = vand.u32 127, %v26_v5  ;;  %s82_s0 = scalar_lea.vmem %s50_s12, 64  ;;  %p87_p6 = scmp.lt.s32.totalorder %s50_s12, %s50_s12 }
  0x10   :  { %vm24_vm1 = vcmp.lt.s32.totalorder %v23_v2, 75  ;;  %p83_p5 = scmp.ne.s32.totalorder %s50_s12, %s82_s0  ;;  %p88_p7 = scmp.lt.s32.totalorder %s82_s0, %s82_s0 }
  0x11   :  { %v25_v3 = vsel %vm24_vm1, %v23_v2, 75  ;;  %vm28_vm3 = vcmp.eq.s32.totalorder %v27_v6, 0 }
  0x12   :  { %v33_v4 = vadd.s32 1, %v25_v3  ;;  %p89_p8 = por %p88_p7, %p87_p6 }
  0x14   :  { %35 = vperm.xlu0 %61, %v33_v4   ;;  %p90_p9 = pnand %p89_p8, %p83_p5 }
  0x18   :  { %30 = vperm.xlu0 %61, %v25_v3  }
  0x8f   :  { %v36_v7 = vpop.permute.xlu0 %35 }
  0x90   :  { %vm37_vm2 = vcmp.eq.s32.totalorder %v27_v6, %v36_v7 }
  0x91   :  { %v38_v9 = vsel %vm37_vm2, 102, %v107_v0 }
  0x93   :  { %v31_v8 = vpop.permute.xlu0 %30 }
  0x94   :  { %vm32_vm4 = vcmp.le.s32.totalorder %v27_v6, %v31_v8 }
  0x95   :  { %v39_v10 = vsel %vm32_vm4, %v21_v1, %v38_v9 }
  0x96   :  { %v40_v11 = vsel %vm28_vm3, 101, %v39_v10 }
  0x97   :  { %42 = vst.msk [vmem:[#allocation5] sm:$0xf] %vm41_vm5, %v40_v11 }
  0x98   :  { %93 = shalt.err (!%p90_p9)
}
  0x99   :  { %52 = dma.vmem_to_hbm [thread:$0]  %s50_s12, 64, %s126_s1, [#allocation4]  }
  0x9a   :  { %104 = dma.done.wait [#allocation4], 64  }
  0x9b   :  { %105 = vsyncadd [#allocation4], 4294967232 }
  0x9c   :  { %56 = vsyncpa [#allocation3], 1 }
  0x9d   :  { %57 = vsyncpa [#allocation4], 1 }

</bundles_post_ra>
